<compile_context>
chip_gen: v5e
topology: v5e:2x2
jax: 0.10.0
libtpu: 0.0.40
codegen_flags: <defaults>
</compile_context>

<pallas_src>
import functools
import math

import jax
import jax.numpy as jnp
from jax.experimental import pallas as pl
from jax.experimental.pallas import tpu as pltpu


# ----------------------------------------------------------------------------
# generation-aware VMEM limit
# ----------------------------------------------------------------------------
def _compute_vmem_limit():
    cap = None
    try:
        info = pltpu.get_tpu_info()
        cap = getattr(info, "vmem_capacity_bytes", None)
    except Exception:
        cap = None
    if not cap:
        cap = 64 * 1024 * 1024  # conservative: v7x physical per-TC VMEM
    # ~3/4 of physical: ~96 MiB on v5e/v6e (128 MiB), ~48 MiB on v7x (64 MiB).
    return int(min(cap * 3 // 4, 100 * 1024 * 1024))


_VMEM_LIMIT = _compute_vmem_limit()


# ----------------------------------------------------------------------------
# tiling helpers
# ----------------------------------------------------------------------------
def _pick_rows(m, target=512):
    """Largest multiple of 8 dividing m that is <= target (full m if small)."""
    if m <= target:
        return m
    t = (target // 8) * 8
    while t >= 8:
        if m % t == 0:
            return t
        t -= 8
    # TODO(synk): pad m / use a cdiv grid with masked edge tiles instead of a
    # full-dimension block when m has no nice divisor.
    return m


def _pick_lanes(n, target=1024):
    """Full n if <= target; else the largest multiple of 256 (then 128)
    dividing n, matching the 256-deep MXU on v6e/v7x."""
    if n <= target:
        return n
    for q in (256, 128):
        t = (target // q) * q
        while t >= q:
            if n % t == 0:
                return t
            t -= q
    # TODO(synk): pad n / masked edge tiles for awkward extents.
    return n


# ----------------------------------------------------------------------------
# dense: tiled matmul + bias + fused activation (bf16 MXU, f32 accumulate)
# x: [E, M, K], w: [E, K, N], b: [E, 1, N]  ->  [E, M, N]
# ----------------------------------------------------------------------------
def _dense_kernel(x_ref, w_ref, b_ref, o_ref, acc_ref, *, activation):
    k = pl.program_id(3)

    @pl.when(k == 0)
    def _():
        acc_ref[...] = jnp.zeros_like(acc_ref)

    acc_ref[...] += jnp.dot(
        x_ref[0].astype(jnp.bfloat16),
        w_ref[0].astype(jnp.bfloat16),
        preferred_element_type=jnp.float32,
    )

    @pl.when(k == pl.num_programs(3) - 1)
    def _():
        y = acc_ref[...] + b_ref[0]
        if activation == "gelu":
            # TODO(synk): exact erf-GELU needs a Mosaic erf lowering; the tanh
            # approximation keeps the transcendental on the EUP slot.
            c = 0.7978845608028654  # sqrt(2/pi)
            y = 0.5 * y * (1.0 + jnp.tanh(c * (y + 0.044715 * y * y * y)))
        elif activation == "tanh":
            y = jnp.tanh(y)
        o_ref[0] = y.astype(o_ref.dtype)


def dense(x, w, b, activation="none", out_dtype=jnp.bfloat16):
    E, M, K = x.shape
    N = w.shape[-1]
    tm = _pick_rows(M)
    tn = _pick_lanes(N)
    tk = _pick_lanes(K)
    grid = (E, M // tm, N // tn, K // tk)
    # TODO(synk): on v5e, if profiles show exposed weight-DMA waits in the
    # k-loop, add pipeline_mode=pl.Buffered(3) on the weight BlockSpec.
    return pl.pallas_call(
        functools.partial(_dense_kernel, activation=activation),
        out_shape=jax.ShapeDtypeStruct((E, M, N), out_dtype),
        grid_spec=pltpu.PrefetchScalarGridSpec(
            num_scalar_prefetch=0,
            grid=grid,
            in_specs=[
                pl.BlockSpec((1, tm, tk), lambda e, i, j, k: (e, i, k)),
                pl.BlockSpec((1, tk, tn), lambda e, i, j, k: (e, k, j)),
                pl.BlockSpec((1, 1, tn), lambda e, i, j, k: (e, 0, j)),
            ],
            out_specs=pl.BlockSpec((1, tm, tn), lambda e, i, j, k: (e, i, j)),
            scratch_shapes=[pltpu.VMEM((tm, tn), jnp.float32)],
        ),
        compiler_params=pltpu.CompilerParams(
            dimension_semantics=("parallel", "parallel", "parallel", "arbitrary"),
            vmem_limit_bytes=_VMEM_LIMIT,
        ),
    )(x, w, b.reshape(E, 1, N))


# ----------------------------------------------------------------------------
# dense + residual-add + LayerNorm fused into the last-k epilogue
# x: [E, M, K], w: [E, K, N], residual: [E, M, N]  ->  [E, M, N]
# (requires tn == N, which holds for N = hidden <= 1024)
# ----------------------------------------------------------------------------
def _dense_ln_kernel(x_ref, w_ref, b_ref, r_ref, g_ref, be_ref, o_ref, acc_ref, *, eps):
    k = pl.program_id(2)

    @pl.when(k == 0)
    def _():
        acc_ref[...] = jnp.zeros_like(acc_ref)

    acc_ref[...] += jnp.dot(
        x_ref[0].astype(jnp.bfloat16),
        w_ref[0].astype(jnp.bfloat16),
        preferred_element_type=jnp.float32,
    )

    @pl.when(k == pl.num_programs(2) - 1)
    def _():
        y = acc_ref[...] + b_ref[0] + r_ref[0].astype(jnp.float32)
        mu = jnp.mean(y, axis=-1, keepdims=True)
        yc = y - mu
        var = jnp.mean(yc * yc, axis=-1, keepdims=True)
        yn = yc * jax.lax.rsqrt(var + eps)
        o_ref[0] = (yn * g_ref[0] + be_ref[0]).astype(o_ref.dtype)


def dense_ln(x, w, b, residual, gamma, beta, eps=1e-12, out_dtype=jnp.bfloat16):
    E, M, K = x.shape
    N = w.shape[-1]
    tm = _pick_rows(M)
    tk = _pick_lanes(K)
    grid = (E, M // tm, K // tk)
    return pl.pallas_call(
        functools.partial(_dense_ln_kernel, eps=eps),
        out_shape=jax.ShapeDtypeStruct((E, M, N), out_dtype),
        grid_spec=pltpu.PrefetchScalarGridSpec(
            num_scalar_prefetch=0,
            grid=grid,
            in_specs=[
                pl.BlockSpec((1, tm, tk), lambda e, i, k: (e, i, k)),
                pl.BlockSpec((1, tk, N), lambda e, i, k: (e, k, 0)),
                pl.BlockSpec((1, 1, N), lambda e, i, k: (e, 0, 0)),
                pl.BlockSpec((1, tm, N), lambda e, i, k: (e, i, 0)),
                pl.BlockSpec((1, 1, N), lambda e, i, k: (e, 0, 0)),
                pl.BlockSpec((1, 1, N), lambda e, i, k: (e, 0, 0)),
            ],
            out_specs=pl.BlockSpec((1, tm, N), lambda e, i, k: (e, i, 0)),
            scratch_shapes=[pltpu.VMEM((tm, N), jnp.float32)],
        ),
        compiler_params=pltpu.CompilerParams(
            dimension_semantics=("parallel", "parallel", "arbitrary"),
            vmem_limit_bytes=_VMEM_LIMIT,
        ),
    )(x, w, b.reshape(E, 1, N), residual, gamma.reshape(E, 1, N), beta.reshape(E, 1, N))


# ----------------------------------------------------------------------------
# standalone LayerNorm (embedding LN only), tiled over rows
# ----------------------------------------------------------------------------
def _layernorm_kernel(x_ref, g_ref, b_ref, o_ref, *, eps):
    x = x_ref[0].astype(jnp.float32)
    mu = jnp.mean(x, axis=-1, keepdims=True)
    xc = x - mu
    var = jnp.mean(xc * xc, axis=-1, keepdims=True)
    y = xc * jax.lax.rsqrt(var + eps)
    o_ref[0] = (y * g_ref[0] + b_ref[0]).astype(o_ref.dtype)


def layer_norm(x, g, b, eps=1e-12, out_dtype=jnp.bfloat16):
    E, M, H = x.shape
    tm = _pick_rows(M)
    grid = (E, M // tm)
    row_spec = pl.BlockSpec((1, tm, H), lambda e, i: (e, i, 0))
    vec_spec = pl.BlockSpec((1, 1, H), lambda e, i: (e, 0, 0))
    return pl.pallas_call(
        functools.partial(_layernorm_kernel, eps=eps),
        out_shape=jax.ShapeDtypeStruct((E, M, H), out_dtype),
        grid_spec=pltpu.PrefetchScalarGridSpec(
            num_scalar_prefetch=0,
            grid=grid,
            in_specs=[row_spec, vec_spec, vec_spec],
            out_specs=row_spec,
        ),
        compiler_params=pltpu.CompilerParams(
            dimension_semantics=("parallel", "parallel"),
            vmem_limit_bytes=_VMEM_LIMIT,
        ),
    )(x, g.reshape(E, 1, H), b.reshape(E, 1, H))


# ----------------------------------------------------------------------------
# attention: one (tower, batch) element per grid step; heads split in VMEM
# from the raw QKV slab; per-head [S,S] f32 softmax temporaries only; output
# written head-merged, lane-dense as (1, S, H).
# ----------------------------------------------------------------------------
def _attention_kernel(qkv_ref, m_ref, o_ref, *, nh, hd, scale):
    H = nh * hd
    mask = m_ref[0]                                   # [1, S] f32 additive mask
    heads = []
    for h in range(nh):
        # fold 1/sqrt(hd) into q once (instead of scaling the [S,S] scores)
        q = (qkv_ref[0, 0, :, pl.ds(h * hd, hd)].astype(jnp.float32)
             * scale).astype(jnp.bfloat16)            # [S, hd]
        k = qkv_ref[0, 0, :, pl.ds(H + h * hd, hd)]   # [S, hd] bf16
        v = qkv_ref[0, 0, :, pl.ds(2 * H + h * hd, hd)]
        s = jnp.einsum("qd,kd->qk", q, k,
                       preferred_element_type=jnp.float32)   # [S, S] f32
        s = s + mask
        mx = jnp.max(s, axis=-1, keepdims=True)
        p = jnp.exp(s - mx)
        denom = jnp.sum(p, axis=-1, keepdims=True)
        p = p * pl.reciprocal(denom, approx=True)     # EUP slot, ~free
        o_h = jnp.einsum("qk,kd->qd", p.astype(jnp.bfloat16), v,
                         preferred_element_type=jnp.float32)  # [S, hd]
        heads.append(o_h.astype(jnp.bfloat16))
    # head-merged, lane-dense [S, H] store (no masked sub-128 lane stores)
    o_ref[0, 0] = jnp.concatenate(heads, axis=-1).astype(o_ref.dtype)
    # TODO(synk): for very long sequences, tile the query axis / add a KV grid
    # axis with flash-style online softmax instead of full [S,S] per head.


def attention(qkv, mask_add, nh, hd):
    # qkv: [E, B, S, 3H] bf16, mask_add: [B, 1, S] f32 -> [E, B, S, H] bf16
    E, B, S, threeH = qkv.shape
    H = nh * hd
    scale = 1.0 / math.sqrt(hd)
    return pl.pallas_call(
        functools.partial(_attention_kernel, nh=nh, hd=hd, scale=scale),
        out_shape=jax.ShapeDtypeStruct((E, B, S, H), jnp.bfloat16),
        grid_spec=pltpu.PrefetchScalarGridSpec(
            num_scalar_prefetch=0,
            grid=(E, B),
            in_specs=[
                pl.BlockSpec((1, 1, S, threeH), lambda e, b: (e, b, 0, 0)),
                pl.BlockSpec((1, 1, S), lambda e, b: (b, 0, 0)),
            ],
            out_specs=pl.BlockSpec((1, 1, S, H), lambda e, b: (e, b, 0, 0)),
        ),
        compiler_params=pltpu.CompilerParams(
            dimension_semantics=("parallel", "parallel"),
            vmem_limit_bytes=_VMEM_LIMIT,
        ),
    )(qkv, mask_add)


# ----------------------------------------------------------------------------
# Deterministic parameter initialization (synthetic weights).
# Matmul weights are bf16 (halves weight DMA); biases / LN / embeddings f32.
# The two towers are stacked on a leading axis of size 2.
# ----------------------------------------------------------------------------
def _w(key, shape):
    return (0.02 * jax.random.normal(key, shape, jnp.float32)).astype(jnp.bfloat16)


def _b(key, n):
    return 0.02 * jax.random.normal(key, (n,), jnp.float32)


def init_tower(key, cfg):
    H, I = cfg["hidden"], cfg["intermediate"]
    n_layers = cfg["num_layers"]
    keys = jax.random.split(key, 4 + n_layers)
    kp = jax.random.split(keys[3], 2)
    params = {
        "word_emb": 0.02 * jax.random.normal(keys[0], (cfg["vocab"], H), jnp.float32),
        "pos_emb": 0.02 * jax.random.normal(keys[1], (cfg["max_pos"], H), jnp.float32),
        "type_emb": 0.02 * jax.random.normal(keys[2], (cfg["type_vocab"], H), jnp.float32),
        "emb_ln_g": jnp.ones((H,), jnp.float32),
        "emb_ln_b": jnp.zeros((H,), jnp.float32),
        "pooler_w": _w(kp[0], (H, H)),
        "pooler_b": _b(kp[1], H),
        "layers": [],
    }
    for li in range(n_layers):
        lk = jax.random.split(keys[4 + li], 8)
        params["layers"].append({
            # fused QKV projection: one [H, 3H] matmul instead of three [H, H]
            "qkv_w": _w(lk[0], (H, 3 * H)),
            "qkv_b": _b(lk[1], 3 * H),
            "attn_out_w": _w(lk[2], (H, H)),
            "attn_out_b": _b(lk[3], H),
            "ln1_g": jnp.ones((H,), jnp.float32),
            "ln1_b": jnp.zeros((H,), jnp.float32),
            "inter_w": _w(lk[4], (H, I)),
            "inter_b": _b(lk[5], I),
            "out_w": _w(lk[6], (I, H)),
            "out_b": _b(lk[7], H),
            "ln2_g": jnp.ones((H,), jnp.float32),
            "ln2_b": jnp.zeros((H,), jnp.float32),
        })
    return params


def init_ensemble(key, cfg, num_labels):
    k1, k2, kc = jax.random.split(key, 3)
    kw, kb = jax.random.split(kc)
    t1 = init_tower(k1, cfg)
    t2 = init_tower(k2, cfg)
    towers = jax.tree_util.tree_map(lambda a, b: jnp.stack([a, b], axis=0), t1, t2)
    return {
        "towers": towers,   # every leaf has a leading E=2 tower axis
        # classifier input = concat of the two pooled outputs (2 * hidden);
        # logits are [B, num_labels] (tiny) -> evaluated in plain JAX / f32.
        "classifier": {
            "w": 0.02 * jax.random.normal(kw, (2 * cfg["hidden"], num_labels), jnp.float32),
            "b": 0.02 * jax.random.normal(kb, (num_labels,), jnp.float32),
        },
    }


# ----------------------------------------------------------------------------
# Forward pass: both BERT towers run together on a leading size-2 axis
# (mirrors BertModel -> pooled_output for each sub-model).
# ----------------------------------------------------------------------------
def bert_towers_forward(tp, cfg, input_ids, token_type_ids, attention_mask):
    E = tp["word_emb"].shape[0]
    B, S = input_ids.shape
    H = cfg["hidden"]
    nh = cfg["heads"]
    hd = H // nh
    M = B * S

    # --- embeddings (gathers = plain-JAX glue) ---
    emb = (tp["word_emb"][:, input_ids]
           + tp["pos_emb"][:, :S][:, None, :, :]
           + tp["type_emb"][:, token_type_ids])                 # [E, B, S, H] f32
    x = layer_norm(emb.reshape(E, M, H), tp["emb_ln_g"], tp["emb_ln_b"])
    # (embedding dropout: identity in eval mode)

    # --- extended attention mask: (1 - mask) * -10000, shared across heads ---
    ext = (1.0 - attention_mask.astype(jnp.float32)) * -10000.0  # [B, S]
    mask_add = ext[:, None, :]                                   # [B, 1, S]

    for layer in tp["layers"]:
        x_in = x                                                 # [E, M, H] bf16
        # fused Q/K/V projection; reshape [E,M,3H] -> [E,B,S,3H] is free (no transpose)
        qkv = dense(x_in, layer["qkv_w"], layer["qkv_b"])        # [E, M, 3H] bf16
        ctx = attention(qkv.reshape(E, B, S, 3 * H), mask_add, nh, hd)  # [E,B,S,H]
        # attn-out projection (full-depth K=H on MXU) with fused residual + LN
        x = dense_ln(ctx.reshape(E, M, H), layer["attn_out_w"], layer["attn_out_b"],
                     x_in, layer["ln1_g"], layer["ln1_b"])
        inter = dense(x, layer["inter_w"], layer["inter_b"], activation="gelu")
        # FFN output projection with fused residual + LN
        x = dense_ln(inter, layer["out_w"], layer["out_b"],
                     x, layer["ln2_g"], layer["ln2_b"])

    hidden = x.reshape(E, B, S, H)
    cls = hidden[:, :, 0, :]                                     # [E, B, H] "CLS"
    pooled = dense(cls, tp["pooler_w"], tp["pooler_b"], activation="tanh")
    return pooled                                                # [E, B, H] bf16


def ensemble_forward(params, cfg, input_ids, token_type_ids=None,
                     attention_mask=None, labels=None):
    if token_type_ids is None:
        token_type_ids = jnp.zeros_like(input_ids)
    if attention_mask is None:
        attention_mask = jnp.ones_like(input_ids)

    pooled = bert_towers_forward(params["towers"], cfg, input_ids,
                                 token_type_ids, attention_mask)   # [2, B, H]
    pooled_cat = jnp.concatenate([pooled[0], pooled[1]], axis=-1).astype(jnp.float32)
    # dropout: eval-mode identity

    # classifier + cross-entropy on [B, num_labels~2]: far below one vreg, so
    # plain JAX / f32 instead of a launch-overhead kernel.
    logits = pooled_cat @ params["classifier"]["w"] + params["classifier"]["b"]
    if labels is not None:
        num_labels = params["classifier"]["w"].shape[1]
        z = logits.reshape(-1, num_labels)
        logp = jax.nn.log_softmax(z, axis=-1)
        nll = -jnp.take_along_axis(logp, labels.reshape(-1)[:, None], axis=-1)[:, 0]
        return jnp.mean(nll)          # CrossEntropyLoss(reduction="mean")
    return logits


# ----------------------------------------------------------------------------
if __name__ == "__main__":
    cfg = dict(vocab=100, hidden=32, num_layers=2, heads=4, intermediate=64,
               max_pos=64, type_vocab=2)
    B, S, num_labels = 2, 8, 2

    key = jax.random.PRNGKey(0)
    kp, kid, ktt, klab = jax.random.split(key, 4)

    params = init_ensemble(kp, cfg, num_labels)
    input_ids = jax.random.randint(kid, (B, S), 0, cfg["vocab"], dtype=jnp.int32)
    token_type_ids = jax.random.randint(ktt, (B, S), 0, cfg["type_vocab"], dtype=jnp.int32)
    attention_mask = jnp.array([[1] * S, [1] * (S - 2) + [0] * 2], dtype=jnp.int32)
    labels = jax.random.randint(klab, (B,), 0, num_labels, dtype=jnp.int32)

    logits = ensemble_forward(params, cfg, input_ids, token_type_ids, attention_mask)
    loss = ensemble_forward(params, cfg, input_ids, token_type_ids, attention_mask, labels)
    jax.block_until_ready((logits, loss))

    assert logits.shape == (B, num_labels)
    assert loss.shape == ()
    print("KERNEL_OK")
</pallas_src>

<mosaic_0001>
module attributes {stable_mosaic.version = 11 : i64} {
  func.func @_layernorm_kernel(%arg0: i32, %arg1: i32, %arg2: memref<1x16x32xf32, #tpu.memory_space<vmem>>, %arg3: memref<1x1x32xf32, #tpu.memory_space<vmem>>, %arg4: memref<1x1x32xf32, #tpu.memory_space<vmem>>, %arg5: memref<1x16x32xbf16, #tpu.memory_space<vmem>>) attributes {dimension_semantics = [#tpu.dimension_semantics<parallel>, #tpu.dimension_semantics<parallel>], iteration_bounds = array<i64: 2, 1>, scalar_prefetch = 0 : i64, scratch_operands = 0 : i64, tpu.core_type = #tpu.core_type<tc>, window_params = [{transform_indices = @transform_0, window_bounds = array<i64: 1, 16, 32>}, {transform_indices = @transform_1, window_bounds = array<i64: 1, 1, 32>}, {transform_indices = @transform_2, window_bounds = array<i64: 1, 1, 32>}, {transform_indices = @transform_3, window_bounds = array<i64: 1, 16, 32>}]} {
    %c0 = arith.constant 0 : index
    %c0_0 = arith.constant 0 : index
    %c0_1 = arith.constant 0 : index
    %0 = vector.load %arg2[%c0, %c0_0, %c0_1] : memref<1x16x32xf32, #tpu.memory_space<vmem>>, vector<1x16x32xf32>
    %1 = vector.shape_cast %0 : vector<1x16x32xf32> to vector<16x32xf32>
    %cst = arith.constant dense<0.000000e+00> : vector<16xf32>
    %2 = vector.multi_reduction <add>, %1, %cst [1] : vector<16x32xf32> to vector<16xf32>
    %3 = vector.shape_cast %2 : vector<16xf32> to vector<16x1xf32>
    %cst_2 = arith.constant 3.200000e+01 : f32
    %4 = vector.broadcast %cst_2 : f32 to vector<16x1xf32>
    %5 = arith.divf %3, %4 : vector<16x1xf32>
    %6 = vector.broadcast %5 : vector<16x1xf32> to vector<16x32xf32>
    %7 = arith.subf %1, %6 : vector<16x32xf32>
    %8 = arith.mulf %7, %7 : vector<16x32xf32>
    %cst_3 = arith.constant dense<0.000000e+00> : vector<16xf32>
    %9 = vector.multi_reduction <add>, %8, %cst_3 [1] : vector<16x32xf32> to vector<16xf32>
    %10 = vector.shape_cast %9 : vector<16xf32> to vector<16x1xf32>
    %cst_4 = arith.constant 3.200000e+01 : f32
    %11 = vector.broadcast %cst_4 : f32 to vector<16x1xf32>
    %12 = arith.divf %10, %11 : vector<16x1xf32>
    %cst_5 = arith.constant 9.99999996E-13 : f32
    %13 = vector.broadcast %cst_5 : f32 to vector<16x1xf32>
    %14 = arith.addf %12, %13 : vector<16x1xf32>
    %15 = math.rsqrt %14 : vector<16x1xf32>
    %16 = vector.broadcast %15 : vector<16x1xf32> to vector<16x32xf32>
    %17 = arith.mulf %7, %16 : vector<16x32xf32>
    %c0_6 = arith.constant 0 : index
    %c0_7 = arith.constant 0 : index
    %c0_8 = arith.constant 0 : index
    %18 = vector.load %arg3[%c0_6, %c0_7, %c0_8] : memref<1x1x32xf32, #tpu.memory_space<vmem>>, vector<1x1x32xf32>
    %19 = vector.shape_cast %18 : vector<1x1x32xf32> to vector<1x32xf32>
    %20 = vector.broadcast %19 : vector<1x32xf32> to vector<16x32xf32>
    %21 = arith.mulf %17, %20 : vector<16x32xf32>
    %c0_9 = arith.constant 0 : index
    %c0_10 = arith.constant 0 : index
    %c0_11 = arith.constant 0 : index
    %22 = vector.load %arg4[%c0_9, %c0_10, %c0_11] : memref<1x1x32xf32, #tpu.memory_space<vmem>>, vector<1x1x32xf32>
    %23 = vector.shape_cast %22 : vector<1x1x32xf32> to vector<1x32xf32>
    %24 = vector.broadcast %23 : vector<1x32xf32> to vector<16x32xf32>
    %25 = arith.addf %21, %24 : vector<16x32xf32>
    %26 = arith.truncf %25 : vector<16x32xf32> to vector<16x32xbf16>
    %c0_12 = arith.constant 0 : index
    %c0_13 = arith.constant 0 : index
    %c0_14 = arith.constant 0 : index
    %27 = vector.load %arg5[%c0_12, %c0_13, %c0_14] : memref<1x16x32xbf16, #tpu.memory_space<vmem>>, vector<1x16x32xbf16>
    %28 = vector.shape_cast %27 : vector<1x16x32xbf16> to vector<16x32xbf16>
    %29 = vector.shape_cast %26 : vector<16x32xbf16> to vector<1x16x32xbf16>
    tpu.vector_store %arg5[%c0_12, %c0_13, %c0_14], %29 {strides = array<i32>} : memref<1x16x32xbf16, #tpu.memory_space<vmem>>, vector<1x16x32xbf16>,
    return
  }
  func.func @transform_0(%arg0: i32, %arg1: i32) -> (i32, i32, i32) {
    %c0_i32 = arith.constant 0 : i32
    %c0_i32_0 = arith.constant 0 : i32
    return %arg0, %arg1, %c0_i32 : i32, i32, i32
  }
  func.func @transform_1(%arg0: i32, %arg1: i32) -> (i32, i32, i32) {
    %c0_i32 = arith.constant 0 : i32
    %c0_i32_0 = arith.constant 0 : i32
    %c0_i32_1 = arith.constant 0 : i32
    return %arg0, %c0_i32, %c0_i32_0 : i32, i32, i32
  }
  func.func @transform_2(%arg0: i32, %arg1: i32) -> (i32, i32, i32) {
    %c0_i32 = arith.constant 0 : i32
    %c0_i32_0 = arith.constant 0 : i32
    %c0_i32_1 = arith.constant 0 : i32
    return %arg0, %c0_i32, %c0_i32_0 : i32, i32, i32
  }
  func.func @transform_3(%arg0: i32, %arg1: i32) -> (i32, i32, i32) {
    %c0_i32 = arith.constant 0 : i32
    %c0_i32_0 = arith.constant 0 : i32
    return %arg0, %arg1, %c0_i32 : i32, i32, i32
  }
}

</mosaic_0001>

<bundles_post_ra>
// kernel: tpu_custom_call.1
= control target key start
LH: loop header
LB: loop body
LE: loop exit
PB: predicated region body
PF: predicated region fallthrough
CT: control target
= control target key end

     0   :  { %s965_s0 = inlined_call_operand.hbm [shape: f32[2,16,32], index: 0, kind: input, shape index: {}]   ;;  %s966_s1 = inlined_call_operand.hbm [shape: f32[2,1,32], index: 1, kind: input, shape index: {}]   ;;  %s967_s2 = inlined_call_operand.hbm [shape: f32[2,1,32], index: 2, kind: input, shape index: {}]   ;;  %s968_s3 = inlined_call_operand.hbm [shape: bf16[2,16,32], index: 3, kind: output, shape index: {}]  }
   0x1   :  { %974 = sst [smem:[#allocation17_spill]] %s966_s1 }
   0x2   :  { %8 = vsyncpa [#allocation3], 0 }
   0x3   :  { %10 = vsyncpa [#allocation3 + $0x1], 0 }
   0x4   :  { %11 = vsyncpa [#allocation6], 0 }
   0x5   :  { %13 = vsyncpa [#allocation6 + $0x1], 0 }
   0x6   :  { %14 = vsyncpa [#allocation4], 0 }
   0x7   :  { %16 = vsyncpa [#allocation4 + $0x1], 0  ;;  %s794_s12 = smov 0   ;;  %s796_s13 = smov 0  }
   0x8   :  { %s798_s14 = smov 0   ;;  %s800_s15 = smov 0  }
   0x9   :  { %s802_s16 = smov 0   ;;  %s804_s17 = smov 0  }
   0xa LB: > { %975 = sst [smem:[#allocation12_spill]] %s755_s14  ;;  %s825_s18 = sadd.s32 4294967295, %s767_s17   ;;  %s767_s17 = sphi %s804_s17, %s22_s17   ;;  %s763_s16 = sphi %s802_s16, %s995_s16   ;;  %s759_s15 = sphi %s800_s15, %s994_s15   ;;  %s755_s14 = sphi %s798_s14, %s990_s14   ;;  %s751_s13 = sphi %s796_s13, %s993_s13   ;;  %s747_s12 = sphi %s794_s12, %s992_s12  }
   0xb   : > { %976 = sst [smem:[#allocation13_spill]] %s767_s17  ;;  %s490_s19 = sadd.s32 4294967294, %s767_s17  }
   0xc   : > { %s34_s20 = sadd.s32 1, %s763_s16  ;;  %s43_s21 = sadd.s32 1, %s755_s14 }
   0xd   : > { %p36_p0 = scmp.ge.s32.totalorder %s34_s20, 2  ;;  %p50_p1 = scmp.ne.s32.totalorder %s755_s14, %s751_s13 }
   0xe   : > { %p51_p2 = scmp.eq.s32.totalorder %s767_s17, 0  ;;  %p56_p3 = scmp.ne.s32.totalorder %s751_s13, %s747_s12 }
   0xf   : > { %s997_s20 = smov (%p36_p0, %s34_s20), 0  ;;  %p57_p5 = scmp.eq.s32.totalorder %s825_s18, 0 }
  0x10   : > { %977 = sst [smem:[#allocation14_spill]] %s997_s20  ;;  %p837_p4 = por %p51_p2, %p50_p1 }
  0x11   : > { %s38_s23 = ssub.s32 %s763_s16, %s997_s20  ;;  %p134_p6 = scmp.eq.s32.totalorder %s825_s18, 1 }
  0x12   : > { %p41_p7 = scmp.eq.s32.totalorder %s38_s23, 0  ;;  %p845_p8 = por %p57_p5, %p56_p3 }
  0x13   : > { %p849_p9 = por %p134_p6, %p50_p1  ;;  %p140_p10 = scmp.eq.s32.totalorder %s490_s19, 1 }
  0x14   : > { %s854_s26 = scalar_select %p41_p7, %s755_s14, %s43_s21  }
  0x15   : > { %p856_p11 = por %p140_p10, %p56_p3  ;;  %p492_p12 = scmp.ge.s32.totalorder %s767_s17, 2 }
  0x16   : > { %981 = sst [smem:[#allocation15_spill]] %s854_s26  ;;  %p528_p13 = scmp.lt.s32.totalorder %s767_s17, 2 }
  0x17   : > { %s982_s27 = scalar_select %p856_p11, 1, 0 }
  0x18   : > { %s863_s28 = sand.u32 1, %s755_s14   ;;  %s184_s29 = sand.u32 1, %s767_s17  }
  0x19   : > { %983 = sst [smem:[#allocation16_spill]] %s982_s27  ;;  %p868_p0 = pnand %p528_p13, %p837_p4 }
  0x1a   : > { %s985_s1 = sld [smem:[#allocation17_spill]]  ;;  %s187_s7 = scalar_lea.vmem [#allocation5], %s863_s28 }
  0x1b   : > { %s194_s8 = sshll.u32 %s187_s7, 4  ;;  %s185_s10 = scalar_lea.sflag [#allocation6], %s184_s29  ;;  %s195_s8 = int_to_ptr.vmem [resolvable:$true] %s194_s8 }
  0x1c   : > { %p496_p1 = scmp.ge.s32.totalorder %s767_s17, 1  ;;  %p216_p2 = scmp.lt.s32.totalorder %s767_s17, 3 }
  0x1d   : > { %s493_s19 = sshll.u32 %s863_s28, 4  ;;  %s504_s21 = sshll.u32 %s763_s16, 4 }
  0x1e   : > { %p881_p3 = pnand %p496_p1, %p216_p2  ;;  %s171_s4 = scalar_lea.hbm %s965_s0, %s504_s21 }
  0x1f   : > { %s172_s5 = sshll.u32 %s171_s4, 4  ;;  %s164_s29 = scalar_lea.vmem [#allocation2], %s493_s19  ;;  %s173_s5 = int_to_ptr.hbm [resolvable:$true] %s172_s5 }
  0x20   : > { %s190_s6 = scalar_lea.hbm %s985_s1, %s763_s16  ;;  %s161_s7 = scalar_lea.sflag [#allocation3], %s863_s28 }
  0x21   : > { %s192_s9 = sshll.u32 %s190_s6, 4  ;;  %s174_s6 = sshll.u32 %s164_s29, 4  ;;  %s193_s9 = int_to_ptr.hbm [resolvable:$true] %s192_s9  ;;  %s175_s6 = int_to_ptr.vmem [resolvable:$true] %s174_s6 }
  0x22   : > { %520 = dma.hbm_to_vmem [thread:$0]  (!%p868_p0), %s193_s9, 16, %s195_s8, %s185_s10  }
  0x23   : > { %s769_s8 = smov 128   ;;  %s770_s9 = smov 8  }
  0x24   : > { %517 = dma.hbm_to_vmem [thread:$0]  (!%p868_p0), %s173_s5, 256, %s175_s6, %s161_s7, %s769_s8, %s769_s8, %s770_s9  }
  0x25   : > { %s207_s26 = scalar_lea.hbm %s967_s2, %s763_s16  ;;  %s204_s17 = scalar_lea.vmem [#allocation7], %s863_s28 }
  0x26   : > { %s209_s14 = sshll.u32 %s207_s26, 4  ;;  %s211_s27 = sshll.u32 %s204_s17, 4  ;;  %s210_s14 = int_to_ptr.hbm [resolvable:$true] %s209_s14  ;;  %s212_s27 = int_to_ptr.vmem [resolvable:$true] %s211_s27 }
  0x27   : > { %523 = dma.hbm_to_vmem [thread:$0]  (!%p868_p0), %s210_s14, 16, %s212_s27, %s185_s10  }
  0x28   : > { %220 = sbr.rel (%p881_p3) target bundleno = 332 (0x14c), region = 32  ;;  %s903_s19 = sand.u32 (!%p881_p3), 1, %s751_s13  }
  0x29   : > { %s497_s21 = sshll.u32 (!%p881_p3), %s903_s19, 4  ;;  %s223_s22 = scalar_lea.sflag (!%p881_p3), [#allocation3], %s903_s19 }
  0x2a   : > { %s226_s1 = scalar_lea.vmem (!%p881_p3), [#allocation2], %s497_s21 }
  0x2d   : > { %734 = dma.done.wait (%p845_p8), %s223_s22, 256  }
  0x2e   : > { %736 = vsyncadd (%p845_p8), %s223_s22, 4294967040  ;;  %s232_s14 = sand.u32 1, %s825_s18   ;;  %s235_s20 = scalar_lea.vmem [#allocation5], %s903_s19 }
  0x2f   : > { %s233_s17 = scalar_lea.sflag [#allocation6], %s232_s14 }
  0x30   : > { %738 = dma.done.wait (%p845_p8), %s233_s17, 32  }
  0x31   : > { %740 = vsyncadd (%p845_p8), %s233_s17, 4294967264  ;;  %vm280_vm0 = vcmask 261120   ;;  %v278_v0 = vld [vmem:[%s226_s1] sm:$0xff]  ;;  %v279_v2 = vld [vmem:[%s226_s1 + $0x8] sm:$0xff]  ;;  %s244_s26 = scalar_lea.vmem [#allocation7], %s903_s19  ;;  %v771_v4 = vmov 32.0  }
  0x32   : > { %v281_v1 = vsel %vm280_vm0, %v278_v0, 0.0  ;;  %v284_v3 = vsel %vm280_vm0, %v279_v2, 0.0  ;;  %585 = vrcp.f32 %v771_v4  ;;  %v583_v35 = vld [vmem:[%s235_s20] ss:$0 sm:$0xff]  ;;  %s498_s18 = sshll.u32 %s903_s19, 3  ;;  %s505_s24 = sshll.u32 %s759_s15, 3 }
  0x33   : > { %282 = vadd.xlane.f32.xlu0 %v281_v1  ;;  %v584_v38 = vld [vmem:[%s244_s26] ss:$0 sm:$0xff]  ;;  %vm346_vm7 = vcmask 257024   ;;  %s363_s30 = scalar_lea.hbm %s968_s3, %s505_s24  ;;  %s275_s10 = scalar_lea.vmem [#allocation8], %s498_s18 }
  0x34   : > { %s364_s11 = sshll.u32 %s275_s10, 4  ;;  %s366_s23 = sshll.u32 %s363_s30, 4  ;;  %s365_s11 = int_to_ptr.vmem [resolvable:$true] %s364_s11  ;;  %s367_s23 = int_to_ptr.hbm [resolvable:$true] %s366_s23 }
  0x35   : > { %s350_s15 = scalar_lea.sflag [#allocation4], %s903_s19  ;;  %s695_s4 = sshra.s32 %s367_s23, 4  ;;  %s696_s4 = int_to_ptr.hbm [resolvable:$true] %s695_s4 }
  0x36   : > { %s697_s5 = scalar_lea.hbm %s696_s4, 8  ;;  %s701_s7 = scalar_lea.hbm %s968_s3, 16 }
  0x37   : > { %p698_p4 = scmp.ne.s32.totalorder %s696_s4, %s697_s5  ;;  %p702_p7 = scmp.lt.s32.totalorder %s696_s4, %s968_s3 }
  0x38   : > { %v586_v5 = vpop.eup %585  ;;  %p703_p8 = scmp.lt.s32.totalorder %s701_s7, %s697_s5 }
  0x39   : > { %v288_v6 = vmul.f32 32.0, %v586_v5  ;;  %vm292_vm1 = vweird.f32 %v586_v5  ;;  %p699_p5 = pnand %p698_p4, %p849_p9 }
  0x3a   : > { %p704_p10 = por %p703_p8, %p702_p7 }
  0x3b   : > { %285 = vadd.xlane.f32.xlu0 %v284_v3  ;;  %v289_v7 = vsub.f32 1.0, %v288_v6  ;;  %p700_p6 = pneg %p699_p5 }
  0x3d   : > { %v290_v8 = vmul.f32 %v586_v5, %v289_v7  ;;  %p705_p13 = pnand %p704_p10, %p700_p6 }
  0x3f   : > { %v291_v9 = vadd.f32 %v586_v5, %v290_v8 }
  0x41   : > { %v293_v10 = vsel %vm292_vm1, %v586_v5, %v291_v9 }
  0xa6   : > { %v283_v11 = vpop.xlane.xlu0 %282 }
  0xa7   : > { %v294_v12 = vmul.f32 %v293_v10, %v283_v11 }
  0xa9   : > { %v296_v13 = vsub.f32 %v278_v0, %v294_v12 }
  0xab   : > { %v298_v14 = vmul.f32 %v296_v13, %v296_v13 }
  0xad   : > { %v300_v15 = vsel %vm280_vm0, %v298_v14, 0.0 }
  0xae   : > { %301 = vadd.xlane.f32.xlu1 %v300_v15  ;;  %v286_v16 = vpop.xlane.xlu0 %285 }
  0xaf   : > { %v295_v17 = vmul.f32 %v293_v10, %v286_v16 }
  0xb1   : > { %v297_v18 = vsub.f32 %v279_v2, %v295_v17 }
  0xb3   : > { %v299_v19 = vmul.f32 %v297_v18, %v297_v18 }
  0xb5   : > { %v303_v20 = vsel %vm280_vm0, %v299_v19, 0.0 }
  0xb6   : > { %304 = vadd.xlane.f32.xlu1 %v303_v20 }
 0x121   : > { %v302_v21 = vpop.xlane.xlu1 %301 }
 0x122   : > { %v306_v22 = vmul.f32 %v302_v21, %v293_v10 }
 0x124   : > { %v308_v23 = vadd.f32 1e-12, %v306_v22 }
 0x126   : > { %587 = vrsqrt.f32 %v308_v23  ;;  %vm316_vm3 = vweird.f32 %v308_v23 }
 0x129   : > { %v305_v24 = vpop.xlane.xlu1 %304 }
 0x12a   : > { %v307_v25 = vmul.f32 %v305_v24, %v293_v10 }
 0x12c   : > { %v588_v26 = vpop.eup %587  ;;  %v309_v27 = vadd.f32 1e-12, %v307_v25 }
 0x12d   : > { %v311_v28 = vmul.f32 %v588_v26, %v308_v23  ;;  %vm317_vm2 = vweird.f32 %v588_v26 }
 0x12e   : > { %589 = vrsqrt.f32 %v309_v27  ;;  %vm318_vm4 = vmor %vm316_vm3, %vm317_vm2  ;;  %vm326_vm6 = vweird.f32 %v309_v27 }
 0x12f   : > { %v312_v29 = vmul.f32 %v588_v26, %v311_v28 }
 0x131   : > { %v313_v30 = vmul.f32 0.5, %v312_v29 }
 0x133   : > { %v314_v31 = vsub.f32 1.5, %v313_v30 }
 0x134   : > { %v590_v32 = vpop.eup %589 }
 0x135   : > { %v315_v33 = vmul.f32 %v588_v26, %v314_v31  ;;  %v321_v34 = vmul.f32 %v590_v32, %v309_v27  ;;  %vm327_vm5 = vweird.f32 %v590_v32 }
 0x136   : > { %vm328_vm8 = vmor %vm326_vm6, %vm327_vm5 }
 0x137   : > { %v319_v36 = vsel %vm318_vm4, %v588_v26, %v315_v33  ;;  %v322_v37 = vmul.f32 %v590_v32, %v321_v34 }
 0x138   : > { %v330_v39 = vmul.f32 %v319_v36, %v296_v13 }
 0x139   : > { %v323_v40 = vmul.f32 0.5, %v322_v37 }
 0x13a   : > { %v336_v41 = vmul.f32 %v583_v35, %v330_v39 }
 0x13b   : > { %v324_v42 = vsub.f32 1.5, %v323_v40 }
 0x13c   : > { %v342_v43 = vadd.f32 %v584_v38, %v336_v41 }
 0x13d   : > { %v325_v44 = vmul.f32 %v590_v32, %v324_v42 }
 0x13e   : > { %v344_v45 = vpack.c.bf16 %v342_v43, %v342_v43 }
 0x13f   : > { %v329_v46 = vsel %vm328_vm8, %v590_v32, %v325_v44 }
 0x140   : > { %v331_v47 = vmul.f32 %v329_v46, %v297_v18  ;;  %347 = vst.msk [vmem:[%s275_s10] sm:$0xf] %vm346_vm7, %v344_v45 }
 0x142   : > { %v337_v48 = vmul.f32 %v583_v35, %v331_v47 }
 0x144   : > { %v343_v49 = vadd.f32 %v584_v38, %v337_v48 }
 0x146   : > { %v345_v50 = vpack.c.bf16 %v343_v49, %v343_v49 }
 0x148   : > { %348 = vst.msk [vmem:[%s275_s10 + $0x4] sm:$0xf] %vm346_vm7, %v345_v50 }
 0x149   : > { %708 = shalt.err (!%p705_p13)
}
 0x14a   : > { %s772_s19 = smov 64   ;;  %s773_s21 = smov 4  }
 0x14b   : > { %512 = dma.vmem_to_hbm [thread:$0]  (%p849_p9), %s365_s11, 128, %s367_s23, %s350_s15, %s772_s19, %s772_s19, %s773_s21  }
 0x14c PF: > { %s988_s1 = sld [smem:[#allocation13_spill]]  ;;  %s381_s14 = sand.u32 1, %s747_s12  }
 0x14d   : > { %p525_p0 = pnand %p492_p12, %p856_p11  ;;  %s382_s17 = scalar_lea.sflag [#allocation4], %s381_s14 }
 0x14f   : > { %p526_p1 = pneg %p525_p0 }
 0x151   : > { %742 = dma.done.wait (%p526_p1), %s382_s17, 128  }
 0x152   : > { %744 = vsyncadd (%p526_p1), %s382_s17, 4294967168  ;;  %s22_s17 = sadd.s32 1, %s988_s1   ;;  %s989_s20 = sld [smem:[#allocation12_spill]] }
 0x153   : > { %p19_p2 = scmp.ge.s32.totalorder %s22_s17, 4   ;;  %s990_s14 = sld [smem:[#allocation15_spill]] }
 0x154   : > { %s991_s25 = sld [smem:[#allocation14_spill]]  ;;  %s992_s12 = smov %s751_s13 }
 0x155   : > { %s994_s15 = smov %s763_s16 }
 0x156   :  { %21 = sbr.rel (!%p19_p2) target bundleno = 10 (0xa), region = 101 }
 0x158   : > { %s993_s13 = smov %s989_s20 }
 0x15a   : > { %s995_s16 = smov %s991_s25 }
 0x15b   :  { %388 = vsyncpa [#allocation3], 1 }
 0x15c   :  { %390 = vsyncpa [#allocation3 + $0x1], 1 }
 0x15d   :  { %391 = vsyncpa [#allocation6], 1 }
 0x15e   :  { %393 = vsyncpa [#allocation6 + $0x1], 1 }
 0x15f   :  { %394 = vsyncpa [#allocation4], 1 }
 0x160   :  { %396 = vsyncpa [#allocation4 + $0x1], 1 }

</bundles_post_ra>
